<compile_context>
chip_gen: v5e
topology: v5e:2x2
jax: 0.10.0
libtpu: 0.0.40
codegen_flags: <defaults>
</compile_context>

<pallas_src>
import jax
import jax.numpy as jnp
from jax import lax
from jax.experimental import pallas as pl
from jax.experimental.pallas import tpu as pltpu


def _round_up(x, m):
    return ((x + m - 1) // m) * m


def policy_forward_kernel(x_ref, w1_ref, b1_ref, w2t_ref, b2t_ref, out_ref):
    """One batch tile: out[:, tile] = softmax(relu(x@W1+b1) @ W2 + b2)^T.

    Layout: actions on sublanes (padded to a multiple of 8), batch on lanes
    (TB, multiple of 128) -> full-lane unmasked stores, minimal padding waste.
    """
    # hidden = relu(x @ W1 + b1): MXU matmul with f32 accumulation, VPU relu.
    h = jnp.dot(x_ref[...], w1_ref[...],
                preferred_element_type=jnp.float32) + b1_ref[...]
    h = jnp.maximum(h, 0.0)

    # logits^T = W2^T @ h^T : (A_sub, H) x (TB, H) contracted over H -> (A_sub, TB)
    logits_t = lax.dot_general(
        w2t_ref[...], h.astype(w2t_ref.dtype),
        dimension_numbers=(((1,), (1,)), ((), ())),
        preferred_element_type=jnp.float32) + b2t_ref[...]
    # NOTE: padded action rows have w2t == 0 exactly and b2t == -inf, so the
    # padded logits are exactly -inf (never NaN) and exp() maps them to 0 —
    # the softmax normalization only counts real actions. Do not move this
    # padding after a dtype cast or use nonzero init.

    # Numerically stable softmax over the action (sublane) axis.
    m = jnp.max(logits_t, axis=0, keepdims=True)       # (1, TB)
    e = jnp.exp(logits_t - m)                           # (A_sub, TB)
    denom = jnp.sum(e, axis=0, keepdims=True)           # (1, TB)
    # Exact reciprocal: probabilities must sum to 1 (they feed Categorical
    # sampling / log_prob downstream); approx EUP rcp left ~1e-3 bias.
    out_ref[...] = e * (1.0 / denom)


def _choose_batch_tile(batch, block_b):
    """Pick a batch tile TB (multiple of 128 — batch sits on the lane axis of
    the transposed output) and padded batch size B_pad = n_steps * TB."""
    b128 = _round_up(batch, 128)
    n_steps = pl.cdiv(b128, _round_up(block_b, 128))
    # Keep >= 2 grid steps when there is enough work so the "parallel" batch
    # axis actually splits across both TensorCores on v7x (no-op on v5e/v6e).
    if b128 > 128:
        n_steps = max(n_steps, 2)
    tb = _round_up(pl.cdiv(b128, n_steps), 128)
    b_pad = _round_up(b128, tb)
    return tb, b_pad


def nn_discrete_policy_forward(x, w1, b1, w2, b2, *, block_b=4096,
                               input_dtype=jnp.bfloat16):
    """Pallas forward pass of NNDiscretePolicy (from_image=False path).

    x:  (B, state_dim) float32
    w1: (state_dim, hidden)    b1: (hidden,) or (1, hidden)
    w2: (hidden, action_dim)   b2: (action_dim,) or (1, action_dim)
    input_dtype: streaming dtype for x / W1 / W2 (default bf16; biases,
      accumulation and softmax math always stay float32). Use jnp.float32 to
      match the PyTorch float32 numerics.
    Returns softmax probabilities of shape (B, action_dim), float32.
    """
    B, S = x.shape
    H = w1.shape[1]
    A = w2.shape[1]

    b1 = jnp.asarray(b1, jnp.float32).reshape(1, H)
    b2 = jnp.asarray(b2, jnp.float32).reshape(A)

    # Transposed params: actions padded to a multiple of 8 sublanes.
    A_sub = _round_up(A, 8)
    w2t = jnp.zeros((A_sub, H), jnp.float32).at[:A, :].set(
        jnp.asarray(w2, jnp.float32).T)
    b2t = jnp.full((A_sub, 1), -jnp.inf, jnp.float32).at[:A, 0].set(b2)

    # Batch tiling (TB | B_pad, TB multiple of 128).
    TB, B_pad = _choose_batch_tile(B, block_b)
    if B_pad != B:
        # Zero rows give finite, valid probabilities and are sliced away.
        # Padding is kept small by _choose_batch_tile; no-op when TB | B.
        x = jnp.pad(x, ((0, B_pad - B), (0, 0)))

    # Streaming dtype for MXU operands only (f32 accumulation everywhere).
    x = x.astype(input_dtype)
    w1 = jnp.asarray(w1).astype(input_dtype)
    w2t = w2t.astype(input_dtype)

    grid = (B_pad // TB,)

    in_itemsize = jnp.dtype(input_dtype).itemsize
    cost = pl.CostEstimate(                     # real (unpadded) sizes
        flops=2 * B * (S * H + H * A),
        transcendentals=B * A,
        bytes_accessed=(B * S * in_itemsize
                        + (S * H + A * H) * in_itemsize
                        + (H + A) * 4
                        + B * A * 4),
    )

    out_t = pl.pallas_call(
        policy_forward_kernel,
        out_shape=jax.ShapeDtypeStruct((A_sub, B_pad), jnp.float32),
        grid=grid,
        in_specs=[
            pl.BlockSpec((TB, S), lambda i: (i, 0)),      # x: streamed tiles
            pl.BlockSpec((S, H), lambda i: (0, 0)),       # W1: VMEM-resident
            pl.BlockSpec((1, H), lambda i: (0, 0)),       # b1: VMEM-resident
            pl.BlockSpec((A_sub, H), lambda i: (0, 0)),   # W2^T (sublane-padded)
            pl.BlockSpec((A_sub, 1), lambda i: (0, 0)),   # b2^T (padded rows -inf)
        ],
        out_specs=pl.BlockSpec((A_sub, TB), lambda i: (0, i)),
        compiler_params=pltpu.CompilerParams(
            dimension_semantics=("parallel",),            # megacore split on v7x
            vmem_limit_bytes=32 * 1024 * 1024,
        ),
        cost_estimate=cost,
    )(x, w1, b1, w2t, b2t)

    # (A_sub, B_pad) -> (B, A): tiny slice + transpose of the real rows only.
    return out_t[:A, :B].T


def init_params(key, state_dim, hidden_size, action_dim):
    """Deterministic synthetic init (mimics PyTorch Linear uniform(-1/sqrt(fan_in), .))."""
    k1, k2, k3, k4 = jax.random.split(key, 4)
    lim1 = 1.0 / jnp.sqrt(state_dim)
    lim2 = 1.0 / jnp.sqrt(hidden_size)
    w1 = jax.random.uniform(k1, (state_dim, hidden_size), jnp.float32, -lim1, lim1)
    b1 = jax.random.uniform(k2, (1, hidden_size), jnp.float32, -lim1, lim1)
    w2 = jax.random.uniform(k3, (hidden_size, action_dim), jnp.float32, -lim2, lim2)
    b2 = jax.random.uniform(k4, (1, action_dim), jnp.float32, -lim2, lim2)
    return w1, b1, w2, b2


def _reference_forward(x, w1, b1, w2, b2, cast=None):
    """Pure-JAX reference (same math as the PyTorch forward). With `cast`,
    emulates the kernel's reduced-precision streaming path in f32 math."""
    if cast is not None:
        x = x.astype(cast).astype(jnp.float32)
        w1 = w1.astype(cast).astype(jnp.float32)
        w2 = w2.astype(cast).astype(jnp.float32)
    h = jnp.maximum(x @ w1 + b1, 0.0)
    if cast is not None:
        h = h.astype(cast).astype(jnp.float32)
    return jax.nn.softmax(h @ w2 + b2, axis=-1)


if __name__ == "__main__":
    # Small shapes consistent with the module: flat state -> hidden -> actions.
    # B=200 with block_b=128 exercises >1 grid step plus batch padding.
    B, STATE_DIM, HIDDEN, ACTION_DIM = 200, 16, 32, 4

    key = jax.random.PRNGKey(0)
    kx, kp = jax.random.split(key)
    x = jax.random.normal(kx, (B, STATE_DIM), dtype=jnp.float32)
    w1, b1, w2, b2 = init_params(kp, STATE_DIM, HIDDEN, ACTION_DIM)

    probs_f32 = nn_discrete_policy_forward(x, w1, b1, w2, b2,
                                           block_b=128, input_dtype=jnp.float32)
    probs_bf16 = nn_discrete_policy_forward(x, w1, b1, w2, b2, block_b=128)
    probs_f32, probs_bf16 = jax.block_until_ready((probs_f32, probs_bf16))

    ref = _reference_forward(x, w1, b1, w2, b2)
    ref_bf16 = _reference_forward(x, w1, b1, w2, b2, cast=jnp.bfloat16)

    assert probs_f32.shape == (B, ACTION_DIM)
    assert probs_bf16.shape == (B, ACTION_DIM)

    # Rows sum to 1 (exact divide in the kernel -> holds to f32 rounding).
    assert jnp.allclose(jnp.sum(probs_f32, axis=-1), 1.0, atol=1e-4)
    assert jnp.allclose(jnp.sum(probs_bf16, axis=-1), 1.0, atol=1e-4)

    # f32 path vs. the exact f32 reference (loose enough to tolerate the TPU
    # MXU's default f32-matmul input handling; interpret / high-precision
    # paths agree to ~1e-6).
    assert jnp.allclose(probs_f32, ref, atol=1e-2, rtol=1e-2)

    # bf16 streaming path: tight against a reference applying the same bf16
    # rounding (f32 accumulation), loose against the exact f32 reference.
    assert jnp.allclose(probs_bf16, ref_bf16, atol=2e-3, rtol=2e-3)
    assert jnp.allclose(probs_bf16, ref, atol=3e-2, rtol=3e-2)

    # TODO(synk): Categorical sampling / log_prob / score / Adam update are
    # distribution + training ops outside the forward hot path; not in-kernel.
    # TODO(synk): from_image=True CNN front-end not implemented (module under
    # test uses the flat-state path).

    print("KERNEL_OK")
</pallas_src>

<mosaic_0001>
module attributes {stable_mosaic.version = 11 : i64} {
  func.func @policy_forward_kernel(%arg0: i32, %arg1: memref<128x16xf32, #tpu.memory_space<vmem>>, %arg2: memref<16x32xf32, #tpu.memory_space<vmem>>, %arg3: memref<1x32xf32, #tpu.memory_space<vmem>>, %arg4: memref<8x32xf32, #tpu.memory_space<vmem>>, %arg5: memref<8x1xf32, #tpu.memory_space<vmem>>, %arg6: memref<8x128xf32, #tpu.memory_space<vmem>>) attributes {dimension_semantics = [#tpu.dimension_semantics<parallel>], iteration_bounds = array<i64: 2>, scalar_prefetch = 0 : i64, scratch_operands = 0 : i64, tpu.core_type = #tpu.core_type<tc>, window_params = [{transform_indices = @transform_0, window_bounds = array<i64: 128, 16>}, {pipeline_mode = #tpu.pipeline_mode<synchronous>, transform_indices = @transform_1, window_bounds = array<i64: 16, 32>}, {pipeline_mode = #tpu.pipeline_mode<synchronous>, transform_indices = @transform_2, window_bounds = array<i64: 1, 32>}, {pipeline_mode = #tpu.pipeline_mode<synchronous>, transform_indices = @transform_3, window_bounds = array<i64: 8, 32>}, {pipeline_mode = #tpu.pipeline_mode<synchronous>, transform_indices = @transform_4, window_bounds = array<i64: 8, 1>}, {transform_indices = @transform_5, window_bounds = array<i64: 8, 128>}]} {
    %c0 = arith.constant 0 : index
    %c0_0 = arith.constant 0 : index
    %0 = vector.load %arg1[%c0, %c0_0] : memref<128x16xf32, #tpu.memory_space<vmem>>, vector<128x16xf32>
    %c0_1 = arith.constant 0 : index
    %c0_2 = arith.constant 0 : index
    %1 = vector.load %arg2[%c0_1, %c0_2] : memref<16x32xf32, #tpu.memory_space<vmem>>, vector<16x32xf32>
    %cst = arith.constant dense<0.000000e+00> : vector<128x32xf32>
    %2 = tpu.matmul %0, %1, %cst {dimension_numbers = #tpu.dot_dimension_numbers<[1], [0], [0], [1], [0, 0, 1, 1], [], []>} : vector<128x16xf32>, vector<16x32xf32>, vector<128x32xf32> -> vector<128x32xf32>
    %c0_3 = arith.constant 0 : index
    %c0_4 = arith.constant 0 : index
    %3 = vector.load %arg3[%c0_3, %c0_4] : memref<1x32xf32, #tpu.memory_space<vmem>>, vector<1x32xf32>
    %4 = vector.broadcast %3 : vector<1x32xf32> to vector<128x32xf32>
    %5 = arith.addf %2, %4 : vector<128x32xf32>
    %cst_5 = arith.constant 0.000000e+00 : f32
    %6 = vector.broadcast %cst_5 : f32 to vector<128x32xf32>
    %7 = arith.maximumf %5, %6 : vector<128x32xf32>
    %c0_6 = arith.constant 0 : index
    %c0_7 = arith.constant 0 : index
    %8 = vector.load %arg4[%c0_6, %c0_7] : memref<8x32xf32, #tpu.memory_space<vmem>>, vector<8x32xf32>
    %cst_8 = arith.constant dense<0.000000e+00> : vector<8x128xf32>
    %9 = tpu.matmul %8, %7, %cst_8 {dimension_numbers = #tpu.dot_dimension_numbers<[1], [1], [0], [0], [0, 0, 1, 0], [], []>} : vector<8x32xf32>, vector<128x32xf32>, vector<8x128xf32> -> vector<8x128xf32>
    %c0_9 = arith.constant 0 : index
    %c0_10 = arith.constant 0 : index
    %10 = vector.load %arg5[%c0_9, %c0_10] : memref<8x1xf32, #tpu.memory_space<vmem>>, vector<8x1xf32>
    %11 = vector.broadcast %10 : vector<8x1xf32> to vector<8x128xf32>
    %12 = arith.addf %9, %11 : vector<8x128xf32>
    %cst_11 = arith.constant dense<0xFF800000> : vector<128xf32>
    %13 = vector.multi_reduction <maximumf>, %12, %cst_11 [0] : vector<8x128xf32> to vector<128xf32>
    %14 = vector.shape_cast %13 : vector<128xf32> to vector<1x128xf32>
    %15 = vector.broadcast %14 : vector<1x128xf32> to vector<8x128xf32>
    %16 = arith.subf %12, %15 : vector<8x128xf32>
    %17 = math.exp %16 : vector<8x128xf32>
    %cst_12 = arith.constant dense<0.000000e+00> : vector<128xf32>
    %18 = vector.multi_reduction <add>, %17, %cst_12 [0] : vector<8x128xf32> to vector<128xf32>
    %19 = vector.shape_cast %18 : vector<128xf32> to vector<1x128xf32>
    %cst_13 = arith.constant 1.000000e+00 : f32
    %20 = vector.broadcast %cst_13 : f32 to vector<1x128xf32>
    %21 = arith.divf %20, %19 : vector<1x128xf32>
    %22 = vector.broadcast %21 : vector<1x128xf32> to vector<8x128xf32>
    %23 = arith.mulf %17, %22 : vector<8x128xf32>
    %c0_14 = arith.constant 0 : index
    %c0_15 = arith.constant 0 : index
    %24 = vector.load %arg6[%c0_14, %c0_15] : memref<8x128xf32, #tpu.memory_space<vmem>>, vector<8x128xf32>
    tpu.vector_store %arg6[%c0_14, %c0_15], %23 {strides = array<i32>} : memref<8x128xf32, #tpu.memory_space<vmem>>, vector<8x128xf32>,
    return
  }
  func.func @transform_0(%arg0: i32) -> (i32, i32) {
    %c0_i32 = arith.constant 0 : i32
    %c0_i32_0 = arith.constant 0 : i32
    return %arg0, %c0_i32 : i32, i32
  }
  func.func @transform_1(%arg0: i32) -> (i32, i32) {
    %c0_i32 = arith.constant 0 : i32
    %c0_i32_0 = arith.constant 0 : i32
    %c0_i32_1 = arith.constant 0 : i32
    return %c0_i32, %c0_i32_0 : i32, i32
  }
  func.func @transform_2(%arg0: i32) -> (i32, i32) {
    %c0_i32 = arith.constant 0 : i32
    %c0_i32_0 = arith.constant 0 : i32
    %c0_i32_1 = arith.constant 0 : i32
    return %c0_i32, %c0_i32_0 : i32, i32
  }
  func.func @transform_3(%arg0: i32) -> (i32, i32) {
    %c0_i32 = arith.constant 0 : i32
    %c0_i32_0 = arith.constant 0 : i32
    %c0_i32_1 = arith.constant 0 : i32
    return %c0_i32, %c0_i32_0 : i32, i32
  }
  func.func @transform_4(%arg0: i32) -> (i32, i32) {
    %c0_i32 = arith.constant 0 : i32
    %c0_i32_0 = arith.constant 0 : i32
    %c0_i32_1 = arith.constant 0 : i32
    return %c0_i32, %c0_i32_0 : i32, i32
  }
  func.func @transform_5(%arg0: i32) -> (i32, i32) {
    %c0_i32 = arith.constant 0 : i32
    %c0_i32_0 = arith.constant 0 : i32
    return %c0_i32, %arg0 : i32, i32
  }
}

</mosaic_0001>

<bundles_post_ra>
// kernel: tpu_custom_call.1
= control target key start
LH: loop header
LB: loop body
LE: loop exit
PB: predicated region body
PF: predicated region fallthrough
CT: control target
= control target key end

     0   :  { %10 = vsyncpa [#allocation3], 0  ;;  %s884_s0 = inlined_call_operand.vmem [shape: f32[256,16], index: 0, kind: input, shape index: {}]   ;;  %s885_s1 = inlined_call_operand.vmem [shape: f32[16,32], index: 1, kind: input, shape index: {}]   ;;  %s886_s2 = inlined_call_operand.vmem [shape: f32[1,32], index: 2, kind: input, shape index: {}]   ;;  %s887_s3 = inlined_call_operand.vmem [shape: f32[8,32], index: 3, kind: input, shape index: {}]   ;;  %s888_s4 = inlined_call_operand.vmem [shape: f32[8,1], index: 4, kind: input, shape index: {}]   ;;  %s889_s5 = inlined_call_operand.hbm [shape: f32[8,256], index: 5, kind: output, shape index: {}]  }
   0x1   :  { %12 = vsyncpa [#allocation3 + $0x1], 0  ;;  %s752_s18 = smov 0   ;;  %s754_s19 = smov 0  }
   0x2   :  { %s756_s20 = smov 0   ;;  %s758_s21 = smov 0  }
   0x3 LB: > { %s773_s22 = sadd.s32 4294967295, %s719_s21   ;;  %s563_s23 = sadd.s32 4294967294, %s719_s21   ;;  %s719_s21 = sphi %s758_s21, %s895_s21   ;;  %s715_s20 = sphi %s756_s20, %s894_s20   ;;  %s711_s19 = sphi %s754_s19, %s893_s19   ;;  %s707_s18 = sphi %s752_s18, %s892_s18  }
   0x4   : > { %s777_s24 = sadd.s32 1, %s719_s21   ;;  %s135_s25 = sadd.s32 1, %s715_s20 }
   0x5   : > { %s132_s26 = ssub.s32 %s719_s21, %s777_s24  ;;  %p145_p0 = scmp.ne.s32.totalorder %s715_s20, %s711_s19 }
   0x6   : > { %p133_p1 = scmp.eq.s32.totalorder %s132_s26, 0  ;;  %p146_p2 = scmp.eq.s32.totalorder %s773_s22, 1 }
   0x7   : > { %p151_p3 = scmp.ne.s32.totalorder %s711_s19, %s707_s18  ;;  %p152_p4 = scmp.eq.s32.totalorder %s563_s23, 1 }
   0x8   : > { %s788_s27 = scalar_select %p133_p1, %s715_s20, %s135_s25  }
   0x9   : > { %p790_p5 = por %p146_p2, %p145_p0  ;;  %p794_p6 = por %p152_p4, %p151_p3 }
   0xa   : > { %p566_p7 = scmp.ge.s32.totalorder %s719_s21, 1  ;;  %p191_p8 = scmp.lt.s32.totalorder %s719_s21, 3 }
   0xc   : > { %p192_p9 = pnand %p566_p7, %p191_p8 }
   0xd   : > { %s568_s9 = sshll.u32 (!%p192_p9), %s773_s22, 4  ;;  %s216_s26 = sand.u32 (!%p192_p9), 1, %s711_s19  }
   0xe   : > { %195 = sbr.rel (%p192_p9) target bundleno = 443 (0x1bb), region = 40  ;;  %p220_p10 = scmp.lt.s32.totalorder (!%p192_p9), %s568_s9, 31 }
   0xf   : > { %s567_s30 = sshll.u32 (!%p192_p9), %s216_s26, 3  ;;  %s604_s6 = sshll.u32 (!%p192_p9), %s773_s22, 3 }
  0x10   : > { %s489_s22 = scalar_lea.sflag (!%p192_p9), [#allocation3], %s216_s26  ;;  %s677_s17 = scalar_lea.hbm (!%p192_p9), %s889_s5, 16 }
  0x13   : > { %v242_v0 = vld [vmem:[%s885_s1 + $0x8] sm:$0xff]  ;;  %v241_v1 = vld [vmem:[%s885_s1] sm:$0xff]  ;;  %s897_s9 = smov (!%p220_p10, %s568_s9), 31  ;;  %vm247_vm0 = vcmask 130048   ;;  %vm384_vm1 = vcmask 261120   ;;  %v721_v56 = vmov 0  }
  0x14   : > { %607 = vmatpush.msra.mxu2 %v242_v0  ;;  %608 = vmatpush.msra.mxu3 %v242_v0  ;;  %s569_s10 = sshll.u32 %s897_s9, 3  ;;  %v652_v22 = vld [vmem:[%s886_s2] ss:$0 sm:$0xff]  ;;  %s499_s9 = scalar_lea.hbm %s889_s5, %s604_s6 }
  0x15   : > { %310 = vmatpush.msra.mxu0 %v242_v0  ;;  %s223_s13 = scalar_lea.vmem %s884_s0, %s569_s10  ;;  %v378_v54 = vld [vmem:[%s888_s4] sm:$0xff]  ;;  %651 = vset.pattern.permute.xlu0 %v721_v56  ;;  %s218_s10 = scalar_lea.vmem [#allocation2], %s567_s30 }
  0x16   : > { %609 = vmatpush.msra.mxu2 %v241_v1  ;;  %610 = vmatpush.msra.mxu3 %v241_v1  ;;  %v231_v2 = vld [vmem:[%s223_s13 + $0x30] sm:$0xff]  ;;  %v238_v3 = vld [vmem:[%s223_s13 + $0x68] sm:$0xff]  ;;  %v232_v4 = vld [vmem:[%s223_s13 + $0x38] sm:$0xff]  ;;  %s501_s11 = sshll.u32 %s218_s10, 4  ;;  %s503_s12 = sshll.u32 %s499_s9, 4  ;;  %s502_s11 = int_to_ptr.vmem [resolvable:$true] %s501_s11  ;;  %s504_s12 = int_to_ptr.hbm [resolvable:$true] %s503_s12 }
  0x17   : > { %311 = vmatpush.msra.mxu0 %v241_v1  ;;  %576 = vmatmul.msk.f32.vlgmr.msra.gmra.mxu2 %vm247_vm0, %v231_v2  ;;  %v239_v5 = vld [vmem:[%s223_s13 + $0x70] sm:$0xff]  ;;  %v225_v6 = vld [vmem:[%s223_s13] sm:$0xff]  ;;  %v240_v8 = vld [vmem:[%s223_s13 + $0x78] sm:$0xff] }
  0x18   : > { %583 = vmatmul.msk.f32.vlgmr.msra.gmra.mxu3 %vm247_vm0, %v238_v3  ;;  %570 = vmatmul.msk.f32.vlgmr.msra.gmra.mxu0 %vm247_vm0, %v225_v6  ;;  %v233_v7 = vld [vmem:[%s223_s13 + $0x40] sm:$0xff]  ;;  %v226_v9 = vld [vmem:[%s223_s13 + $0x8] sm:$0xff]  ;;  %v227_v11 = vld [vmem:[%s223_s13 + $0x10] sm:$0xff] }
  0x19   : > { %v234_v10 = vld [vmem:[%s223_s13 + $0x48] sm:$0xff]  ;;  %v235_v12 = vld [vmem:[%s223_s13 + $0x50] sm:$0xff]  ;;  %v228_v13 = vld [vmem:[%s223_s13 + $0x18] sm:$0xff]  ;;  %381 = vperm.xlu0 %651, %v378_v54  }
  0x1a   : > { %v236_v14 = vld [vmem:[%s223_s13 + $0x58] sm:$0xff]  ;;  %v229_v15 = vld [vmem:[%s223_s13 + $0x20] sm:$0xff]  ;;  %v230_v17 = vld [vmem:[%s223_s13 + $0x28] sm:$0xff] }
  0x1b   : > { %v237_v16 = vld [vmem:[%s223_s13 + $0x60] sm:$0xff]  ;;  %s671_s13 = sshra.s32 %s504_s12, 4  ;;  %s672_s13 = int_to_ptr.hbm [resolvable:$true] %s671_s13 }
  0x1c   : > { %s673_s14 = scalar_lea.hbm %s672_s13, 8  ;;  %p678_p0 = scmp.lt.s32.totalorder %s672_s13, %s889_s5 }
  0x1d   : > { %p674_p11 = scmp.ne.s32.totalorder %s672_s13, %s673_s14  ;;  %p679_p1 = scmp.lt.s32.totalorder %s677_s17, %s673_s14 }
  0x1f   : > { %577 = vmatmul.msk.f32.gmra.mxu2 %vm247_vm0, %v232_v4  ;;  %p675_p12 = pnand %p674_p11, %p790_p5  ;;  %p680_p2 = por %p679_p1, %p678_p0 }
  0x20   : > { %584 = vmatmul.msk.f32.gmra.mxu3 %vm247_vm0, %v239_v5  ;;  %571 = vmatmul.msk.f32.gmra.mxu0 %vm247_vm0, %v226_v9  ;;  %v377_v5 = vld [vmem:[%s887_s3] sm:$0xff] }
  0x21   : > { %p676_p13 = pneg %p675_p12 }
  0x23   : > { %p681_p3 = pnand %p680_p2, %p676_p13 }
  0x27   : > { %578 = vmatmul.msk.f32.gmra.mxu2 %vm247_vm0, %v233_v7 }
  0x28   : > { %585 = vmatmul.msk.f32.gmra.mxu3 %vm247_vm0, %v240_v8  ;;  %572 = vmatmul.msk.f32.gmra.mxu0 %vm247_vm0, %v227_v11 }
  0x2f   : > { %579 = vmatmul.msk.f32.gmra.mxu2 %vm247_vm0, %v234_v10 }
  0x30   : > { %573 = vmatmul.msk.f32.gmra.mxu0 %vm247_vm0, %v228_v13 }
  0x37   : > { %580 = vmatmul.msk.f32.gmra.mxu2 %vm247_vm0, %v235_v12 }
  0x38   : > { %574 = vmatmul.msk.f32.gmra.mxu0 %vm247_vm0, %v229_v15 }
  0x3f   : > { %581 = vmatmul.msk.f32.gmra.mxu2 %vm247_vm0, %v236_v14 }
  0x40   : > { %575 = vmatmul.msk.f32.gmra.mxu0 %vm247_vm0, %v230_v17 }
  0x47   : > { %582 = vmatmul.msk.f32.gmra.mxu2 %vm247_vm0, %v237_v16 }
  0x8b   : > { %v382_v6 = vpop.permute.xlu0 %381 }
  0x95   : > { %v313_v28 = vpop.f32.mrf.mxu0 }
  0x96   : > { %v314_v2 = vadd.f32 %v652_v22, %v313_v28 }
  0x98   : > { %v361_v4 = vmax.f32 %v314_v2, 0.0 }
  0x9a   : > { %v331_v18 = vpop.f32.mrf.mxu2 }
  0x9b   : > { %v352_v19 = vpop.f32.mrf.mxu3  ;;  %v332_v52 = vadd.f32 %v652_v22, %v331_v18 }
  0x9c   : > { %v353_v30 = vadd.f32 %v652_v22, %v352_v19 }
  0x9d   : > { %v316_v33 = vpop.f32.mrf.mxu0  ;;  %v367_v57 = vmax.f32 %v332_v52, 0.0 }
  0x9e   : > { %v374_v32 = vmax.f32 %v353_v30, 0.0  ;;  %v317_v0 = vadd.f32 %v652_v22, %v316_v33 }
  0xa0   : > { %v362_v3 = vmax.f32 %v317_v0, 0.0 }
  0xa2   : > { %v334_v20 = vpop.f32.mrf.mxu2 }
  0xa3   : > { %v355_v21 = vpop.f32.mrf.mxu3  ;;  %v335_v49 = vadd.f32 %v652_v22, %v334_v20 }
  0xa4   : > { %v356_v25 = vadd.f32 %v652_v22, %v355_v21 }
  0xa5   : > { %v319_v36 = vpop.f32.mrf.mxu0  ;;  %v368_v53 = vmax.f32 %v335_v49, 0.0 }
  0xa6   : > { %v375_v29 = vmax.f32 %v356_v25, 0.0  ;;  %v320_v62 = vadd.f32 %v652_v22, %v319_v36 }
  0xa8   : > { %v363_v1 = vmax.f32 %v320_v62, 0.0 }
  0xaa   : > { %v337_v23 = vpop.f32.mrf.mxu2 }
  0xab   : > { %v358_v24 = vpop.f32.mrf.mxu3  ;;  %v338_v47 = vadd.f32 %v652_v22, %v337_v23 }
  0xac   : > { %v359_v26 = vadd.f32 %v652_v22, %v358_v24 }
  0xad   : > { %v322_v39 = vpop.f32.mrf.mxu0  ;;  %v369_v50 = vmax.f32 %v338_v47, 0.0 }
  0xae   : > { %v376_v27 = vmax.f32 %v359_v26, 0.0  ;;  %v323_v60 = vadd.f32 %v652_v22, %v322_v39 }
  0xb0   : > { %586 = vmatpush.xpose.msk.msra.mxu1 %vm384_vm1, %v376_v27  ;;  %v364_v63 = vmax.f32 %v323_v60, 0.0 }
  0xb2   : > { %v340_v31 = vpop.f32.mrf.mxu2 }
  0xb3   : > { %v341_v44 = vadd.f32 %v652_v22, %v340_v31 }
  0xb4   : > { %587 = vmatpush.xpose.msk.msra.mxu1 %vm384_vm1, %v375_v29 }
  0xb5   : > { %v325_v46 = vpop.f32.mrf.mxu0  ;;  %v370_v48 = vmax.f32 %v341_v44, 0.0 }
  0xb6   : > { %v326_v59 = vadd.f32 %v652_v22, %v325_v46 }
  0xb8   : > { %588 = vmatpush.xpose.msk.msra.mxu1 %vm384_vm1, %v374_v32  ;;  %v365_v61 = vmax.f32 %v326_v59, 0.0 }
  0xba   : > { %v343_v34 = vpop.f32.mrf.mxu2 }
  0xbb   : > { %v344_v42 = vadd.f32 %v652_v22, %v343_v34 }
  0xbd   : > { %v371_v45 = vmax.f32 %v344_v42, 0.0  ;;  %v328_v51 = vpop.f32.mrf.mxu0 }
  0xbe   : > { %v329_v55 = vadd.f32 %v652_v22, %v328_v51 }
  0xc0   : > { %v366_v58 = vmax.f32 %v329_v55, 0.0 }
  0xc2   : > { %v346_v35 = vpop.f32.mrf.mxu2 }
  0xc3   : > { %v347_v40 = vadd.f32 %v652_v22, %v346_v35 }
  0xc5   : > { %v372_v43 = vmax.f32 %v347_v40, 0.0 }
  0xca   : > { %v349_v37 = vpop.f32.mrf.mxu2 }
  0xcb   : > { %v350_v38 = vadd.f32 %v652_v22, %v349_v37 }
  0xcd   : > { %v373_v41 = vmax.f32 %v350_v38, 0.0 }
  0xcf   : > { %589 = vmatpush.xpose.msk.msra.mxu1 %vm384_vm1, %v373_v41 }
  0xd3   : > { %590 = vmatpush.xpose.msk.msra.mxu1 %vm384_vm1, %v372_v43 }
  0xd7   : > { %591 = vmatpush.xpose.msk.msra.mxu1 %vm384_vm1, %v371_v45 }
  0xdb   : > { %592 = vmatpush.xpose.msk.msra.mxu1 %vm384_vm1, %v370_v48 }
  0xdf   : > { %593 = vmatpush.xpose.msk.msra.mxu1 %vm384_vm1, %v369_v50 }
  0xe3   : > { %594 = vmatpush.xpose.msk.msra.mxu1 %vm384_vm1, %v368_v53 }
  0xe7   : > { %595 = vmatpush.xpose.msk.msra.mxu1 %vm384_vm1, %v367_v57 }
  0xeb   : > { %596 = vmatpush.xpose.msk.msra.mxu1 %vm384_vm1, %v366_v58 }
  0xef   : > { %597 = vmatpush.xpose.msk.msra.mxu1 %vm384_vm1, %v365_v61 }
  0xf3   : > { %598 = vmatpush.xpose.msk.msra.mxu1 %vm384_vm1, %v364_v63 }
  0xf7   : > { %599 = vmatpush.xpose.msk.msra.mxu1 %vm384_vm1, %v363_v1 }
  0xfb   : > { %600 = vmatpush.xpose.msk.msra.mxu1 %vm384_vm1, %v362_v3 }
  0xff   : > { %601 = vmatpush.xpose.msk.msra.mxu1 %vm384_vm1, %v361_v4 }
 0x102   : > { %602 = vmatmul.msk.f32.vlgmr.msra.gmra.mxu1 %vm384_vm1, %v377_v5 }
 0x17f   : > { %v453_v7 = vpop.f32.mrf.mxu1 }
 0x180   : > { %v454_v8 = vadd.f32 %v453_v7, %v382_v6 }
 0x182   : > { %v456_v9 = vrot.slane %v454_v8, 4 }
 0x184   : > { %v457_v10 = vmax.f32 %v454_v8, %v456_v9 }
 0x186   : > { %v458_v11 = vrot.slane %v457_v10, 2 }
 0x188   : > { %v459_v12 = vmax.f32 %v457_v10, %v458_v11 }
 0x18a   : > { %v460_v13 = vrot.slane %v459_v12, 1 }
 0x18c   : > { %v461_v14 = vmax.f32 %v459_v12, %v460_v13 }
 0x18e   : > { %v462_v15 = vsub.f32 %v454_v8, %v461_v14 }
 0x190   : > { %v463_v16 = vmul.f32 1.442695, %v462_v15 }
 0x192   : > { %653 = vpow2.f32 %v463_v16 }
 0x198   : > { %v654_v17 = vpop.eup %653 }
 0x199   : > { %v465_v18 = vrot.slane %v654_v17, 4 }
 0x19b   : > { %v466_v19 = vadd.f32 %v654_v17, %v465_v18 }
 0x19d   : > { %v467_v20 = vrot.slane %v466_v19, 2 }
 0x19f   : > { %v468_v21 = vadd.f32 %v467_v20, %v466_v19 }
 0x1a1   : > { %v469_v22 = vrot.slane %v468_v21, 1 }
 0x1a3   : > { %v470_v23 = vadd.f32 %v469_v22, %v468_v21 }
 0x1a5   : > { %655 = vrcp.f32 %v470_v23  ;;  %v482_v27 = vand.u32 2147483648, %v470_v23  ;;  %v480_v29 = vand.u32 2147483647, %v470_v23  ;;  %vm476_vm3 = vweird.f32 %v470_v23 }
 0x1a7   : > { %v483_v31 = vor.u32 1.1754944e-38, %v482_v27  ;;  %vm481_vm5 = vcmp.eq.f32.partialorder %v480_v29, 8.507059e+37 }
 0x1ab   : > { %v656_v24 = vpop.eup %655 }
 0x1ac   : > { %v472_v25 = vmul.f32 %v656_v24, %v470_v23  ;;  %vm477_vm2 = vweird.f32 %v656_v24 }
 0x1ad   : > { %vm478_vm4 = vmor %vm476_vm3, %vm477_vm2 }
 0x1ae   : > { %v473_v26 = vsub.f32 1.0, %v472_v25 }
 0x1b0   : > { %v474_v28 = vmul.f32 %v656_v24, %v473_v26 }
 0x1b2   : > { %v475_v30 = vadd.f32 %v656_v24, %v474_v28 }
 0x1b4   : > { %v479_v32 = vsel %vm478_vm4, %v656_v24, %v475_v30 }
 0x1b5   : > { %v484_v33 = vsel %vm481_vm5, %v483_v31, %v479_v32 }
 0x1b6   : > { %v486_v34 = vmul.f32 %v654_v17, %v484_v33 }
 0x1b8   : > { %487 = vst [vmem:[%s218_s10] sm:$0xff] %v486_v34 }
 0x1b9   : > { %684 = shalt.err (!%p681_p3)
}
 0x1ba   : > { %611 = dma.vmem_to_hbm [thread:$0]  (%p790_p5), %s502_s11, 128, %s504_s12, %s489_s22  }
 0x1bb PF: > { %p617_p4 = scmp.ge.s32.totalorder %s719_s21, 2  ;;  %s515_s26 = sand.u32 1, %s707_s18  }
 0x1bc   : > { %s516_s30 = scalar_lea.sflag [#allocation3], %s515_s26 }
 0x1bd   : > { %p614_p7 = pnand %p617_p4, %p794_p6 }
 0x1bf   : > { %p615_p8 = pneg %p614_p7 }
 0x1c1   : > { %702 = dma.done.wait (%p615_p8), %s516_s30, 128  }
 0x1c2   : > { %704 = vsyncadd (%p615_p8), %s516_s30, 4294967168  ;;  %p15_p9 = scmp.ge.s32.totalorder %s777_s24, 4   ;;  %s892_s18 = smov %s711_s19 }
 0x1c3   : > { %s893_s19 = smov %s715_s20  ;;  %s894_s20 = smov %s788_s27 }
 0x1c4   : > { %s895_s21 = smov %s777_s24  ;;  %17 = sbr.rel (!%p15_p9) target bundleno = 3 (0x3), region = 75 }
 0x1c9   :  { %522 = vsyncpa [#allocation3], 1 }
 0x1ca   :  { %524 = vsyncpa [#allocation3 + $0x1], 1 }

</bundles_post_ra>
